<compile_context>
chip_gen: v5e
topology: v5e:2x2
jax: 0.10.0
libtpu: 0.0.40
codegen_flags: <defaults>
</compile_context>

<pallas_src>
import functools

import jax
import jax.numpy as jnp
from jax import lax
from jax.experimental import pallas as pl
from jax.experimental.pallas import tpu as pltpu


def _round_up(v, m):
    return (v + m - 1) // m * m


def _linear_attn_kernel(x_ref, w_ref, b_ref, gamma_ref, o_ref, *,
                        eps, cqk, cqk_pad, n, bt):
    """One grid step owns `bt` batch elements.

    x_ref : (C, bt*N)            caller dtype (transposed layout)
    w_ref : (2*cqk_pad + C, C)   fused, row-padded projection weight
    b_ref : (2*cqk_pad + C, 1)   fused bias (f32, pad rows zero)
    gamma : (1,) scalar in SMEM
    o_ref : (bt, C, N)           caller dtype (natural output layout)
    """
    w = w_ref[...]
    b = b_ref[...]
    gamma = gamma_ref[0]

    x = x_ref[...]                                           # (C, bt*N)

    # One deep, lane-dense projection for the whole batch tile (single MXU
    # matmul); bias broadcast happens once here, not once per batch element.
    proj = jnp.dot(w, x, preferred_element_type=jnp.float32) + b   # (Cproj_pad, bt*N)

    q = proj[:cqk_pad]                                       # pad rows are exactly 0
    k = proj[cqk_pad:2 * cqk_pad]
    v = proj[2 * cqk_pad:]                                   # (C, bt*N)

    # Column-wise l2 norm over channels (per batch/pixel).  Zero pad rows do
    # not perturb the sum of squares and stay zero after scaling.
    # NOTE: faithful to the torch module -> no eps guard (all-zero column
    # would produce inf/NaN there too).
    qn = q * lax.rsqrt(jnp.sum(q * q, axis=0, keepdims=True))
    kn = k * lax.rsqrt(jnp.sum(k * k, axis=0, keepdims=True))

    # Fold value_sum (and its broadcast-add) into the MXU: set the first zero
    # pad row (index cqk) of Qn/Kn to ones.  Remaining pad rows stay zero.
    ones_row = (lax.broadcasted_iota(jnp.int32, (cqk_pad, 1), 0) == cqk
                ).astype(jnp.float32)
    qn_aug = qn + ones_row
    kn_aug = kn + ones_row

    xf = x.astype(jnp.float32)
    n_f = jnp.float32(n)

    # Per-batch contractions over N.  All slices are static and lane-aligned
    # (n is a multiple of 128); with the projection batched, the per-iteration
    # intermediates are tiny ((cqk_pad, C) and (C, n)), so a static loop keeps
    # vreg pressure low.
    for i in range(bt):
        s = slice(i * n, (i + 1) * n)
        qn_i = qn[:, s]
        kn_i = kn[:, s]
        v_i = v[:, s]

        # tailor[p] = 1 / (N + sum_c Qn[c,p] * (sum_p' Kn[c,p'] + eps))
        ksum = jnp.sum(kn_i, axis=1, keepdims=True)                        # (cqk_pad, 1)
        denom = n_f + jnp.sum(qn_i * (ksum + eps), axis=0, keepdims=True)  # (1, n)
        tailor = pl.reciprocal(denom, approx=False)     # exact: torch parity

        # matrix_aug[m, c] = sum_p Kn_aug[m, p] * V[c, p]; row `cqk` = vsum^T.
        matrix_aug = lax.dot_general(
            kn_aug[:, s], v_i, (((1,), (1,)), ((), ())),
            preferred_element_type=jnp.float32)                            # (cqk_pad, C)
        # msum[c, p] = vsum[c] + sum_m Qn[m, p] * matrix[m, c]
        # (vsum arrives via qn_aug's ones row hitting matrix_aug's vsum row).
        msum = lax.dot_general(
            matrix_aug, qn_aug[:, s], (((0,), (0,)), ((), ())),
            preferred_element_type=jnp.float32)                            # (C, n)

        o_ref[i] = (xf[:, s] + gamma * (msum * tailor)).astype(o_ref.dtype)


def _num_tensorcores():
    """Best-effort: 2 TensorCores on v7x, 1 elsewhere (CPU/interpret -> 1)."""
    try:
        kind = (jax.devices()[0].device_kind or "").lower()
    except Exception:
        return 1
    return 2 if "v7" in kind else 1


def _pick_block_b(B, C, N, itemsize, num_tc):
    """Batch-tile size (divisor of B).

    HBM-bound kernel -> biggest tile that fits: ~6 MiB input tile on 1-TC
    chips (v5e/v6e), ~4 MiB on 2-TC / 64 MiB-VMEM v7x.  On v7x keep an even
    number of grid steps so both TensorCores stay busy; on 1-TC chips do NOT
    force >=2 grid steps (one fewer fixed ~0.35us per-step overhead).
    """
    per_b = max(1, C * N * itemsize)
    target = (4 << 20) if num_tc == 2 else (6 << 20)
    cap = int(max(1, min(B, target // per_b)))
    if num_tc == 2 and B >= 2:
        cap = min(cap, max(1, B // 2))
    best = 1
    for d in range(1, cap + 1):
        if B % d != 0:
            continue
        steps = B // d
        if num_tc == 2 and steps > 1 and steps % 2 != 0:
            continue
        best = d
    return best


def linear_attention(x, wq, bq, wk, bk, wv, bv, gamma, *, eps=1e-6,
                     block_b=None):
    """x: (B, C, W, H) with W == H.  Returns same shape/dtype.

    wq/wk: (Cqk, C), wv: (C, C) are the 1x1-conv weights; biases are 1-D.
    bf16 x keeps bf16 through HBM and the MXU; compute is f32 downstream.
    """
    B, C, W, H = x.shape
    assert W == H, "square spatial only (torch view(h,w)/(w,h) only cancels for W==H)"
    N = W * H
    assert N % 128 == 0, "W*H must be a multiple of 128 for lane-aligned batch slices"
    Cqk = wq.shape[0]
    assert x.dtype in (jnp.float32, jnp.bfloat16)

    # Pad q/k row blocks to the sublane tile and reserve >=1 zero pad row for
    # the ones-row (value_sum) trick.
    cqk_pad = _round_up(Cqk + 1, 8)
    Cproj_pad = 2 * cqk_pad + C

    compute_dtype = jnp.bfloat16 if x.dtype == jnp.bfloat16 else jnp.float32

    def pad_rows(m, rows):
        return jnp.pad(m.astype(jnp.float32), ((0, rows - m.shape[0]), (0, 0)))

    w_fused = jnp.concatenate(
        [pad_rows(wq.reshape(Cqk, C), cqk_pad),
         pad_rows(wk.reshape(Cqk, C), cqk_pad),
         wv.reshape(C, C).astype(jnp.float32)], axis=0).astype(compute_dtype)
    b_fused = jnp.concatenate(
        [pad_rows(bq.reshape(Cqk, 1), cqk_pad),
         pad_rows(bk.reshape(Cqk, 1), cqk_pad),
         bv.reshape(C, 1).astype(jnp.float32)], axis=0)            # (Cproj_pad, 1) f32
    gamma1 = gamma.reshape(1).astype(jnp.float32)                  # SMEM scalar

    # Lane-dense input layout: channels on sublanes, (batch, pixel) on lanes.
    x_t = x.reshape(B, C, N).transpose(1, 0, 2).reshape(C, B * N)

    num_tc = _num_tensorcores()
    itemsize = jnp.dtype(x.dtype).itemsize
    if block_b is None:
        block_b = _pick_block_b(B, C, N, itemsize, num_tc)
    assert B % block_b == 0, (B, block_b)
    grid = (B // block_b,)

    # Explicit scoped-VMEM limit (defaults clip long before physical VMEM on
    # v5e/v6e; 48 MiB stays safe on v7x's 64 MiB).
    in_tile = C * block_b * N * itemsize
    out_tile = block_b * C * N * itemsize
    f32_live = 3 * Cproj_pad * block_b * N * 4          # proj + qn/kn/v style temps
    vmem_limit = int(min(max(2 * (in_tile + out_tile) + f32_live + (2 << 20),
                             32 << 20), 48 << 20))

    kernel = functools.partial(_linear_attn_kernel, eps=eps, cqk=Cqk,
                               cqk_pad=cqk_pad, n=N, bt=block_b)

    out_flat = pl.pallas_call(
        kernel,
        out_shape=jax.ShapeDtypeStruct((B, C, N), x.dtype),
        grid_spec=pltpu.PrefetchScalarGridSpec(
            num_scalar_prefetch=0,
            grid=grid,
            in_specs=[
                pl.BlockSpec((C, block_b * N), lambda g: (0, g)),        # x (transposed)
                pl.BlockSpec((Cproj_pad, C), lambda g: (0, 0)),          # fused W
                pl.BlockSpec((Cproj_pad, 1), lambda g: (0, 0)),          # fused b
                pl.BlockSpec(memory_space=pltpu.MemorySpace.SMEM),       # gamma
            ],
            out_specs=pl.BlockSpec((block_b, C, N), lambda g: (g, 0, 0)),
        ),
        compiler_params=pltpu.CompilerParams(
            dimension_semantics=("parallel",),
            vmem_limit_bytes=vmem_limit),
    )(x_t, w_fused, b_fused, gamma1)

    return out_flat.reshape(B, C, W, H)


def linear_attention_ref(x, wq, bq, wk, bk, wv, bv, gamma, *, eps=1e-6):
    """Plain-JAX reference mirroring the PyTorch forward exactly (f32 math)."""
    B, C, W, H = x.shape
    N = W * H
    hi = jax.lax.Precision.HIGHEST
    xf = x.reshape(B, C, N).astype(jnp.float32)
    wqf, wkf, wvf = (w.astype(jnp.float32) for w in (wq, wk, wv))
    Q = jnp.einsum('oc,bcn->bon', wqf, xf, precision=hi) + bq[None, :, None]
    K = jnp.einsum('oc,bcn->bon', wkf, xf, precision=hi) + bk[None, :, None]
    V = jnp.einsum('oc,bcn->bon', wvf, xf, precision=hi) + bv[None, :, None]

    def l2n(t):
        return t / jnp.linalg.norm(t, axis=-2, keepdims=True)

    Qn = jnp.transpose(l2n(Q), (0, 2, 1))            # (B, N, Cqk)
    Kn = l2n(K)                                      # (B, Cqk, N)
    tailor = 1.0 / (N + jnp.einsum('bnc,bc->bn', Qn, jnp.sum(Kn, -1) + eps,
                                   precision=hi))
    vsum = jnp.sum(V, -1)[:, :, None]                # (B, C, 1)
    matrix = jnp.einsum('bmn,bcn->bmc', Kn, V, precision=hi)
    msum = vsum + jnp.einsum('bnm,bmc->bcn', Qn, matrix, precision=hi)
    wval = msum * tailor[:, None, :]
    out = xf + gamma.reshape(()).astype(jnp.float32) * wval
    return out.reshape(B, C, W, H).astype(x.dtype)


def _make_inputs(key, B, C, Cqk, W, H, dtype=jnp.float32):
    kx, kq, kbq, kk, kbk, kv, kbv, kg = jax.random.split(key, 8)
    x = jax.random.normal(kx, (B, C, W, H), dtype=jnp.float32).astype(dtype)
    wq = jax.random.normal(kq, (Cqk, C), dtype=jnp.float32) * 0.1
    bq = jax.random.normal(kbq, (Cqk,), dtype=jnp.float32) * 0.1
    wk = jax.random.normal(kk, (Cqk, C), dtype=jnp.float32) * 0.1
    bk = jax.random.normal(kbk, (Cqk,), dtype=jnp.float32) * 0.1
    wv = jax.random.normal(kv, (C, C), dtype=jnp.float32) * 0.1
    bv = jax.random.normal(kbv, (C,), dtype=jnp.float32) * 0.1
    # Module init has gamma = zeros(1); use a nonzero deterministic value so
    # the attention path is actually exercised by the check.
    gamma = jax.random.normal(kg, (1,), dtype=jnp.float32) * 0.5
    return x, wq, bq, wk, bk, wv, bv, gamma


def _max_err(a, b):
    return float(jnp.max(jnp.abs(a.astype(jnp.float32) - b.astype(jnp.float32))))


if __name__ == "__main__":
    C, scale = 32, 8                   # in_places=32, scale=8 -> Cqk=4
    Cqk = C // scale
    key = jax.random.PRNGKey(0)
    k1, k2, k3 = jax.random.split(key, 3)

    # Case 1: small batch (typical module use).
    x, wq, bq, wk, bk, wv, bv, gamma = _make_inputs(k1, 2, C, Cqk, 16, 16)
    out = jax.block_until_ready(
        linear_attention(x, wq, bq, wk, bk, wv, bv, gamma))
    ref = linear_attention_ref(x, wq, bq, wk, bk, wv, bv, gamma)
    assert out.shape == x.shape and out.dtype == x.dtype
    assert _max_err(out, ref) < 2e-4, _max_err(out, ref)

    # Case 2: larger batch exercises the batched (bt > 1) tile path.
    x, wq, bq, wk, bk, wv, bv, gamma = _make_inputs(k2, 8, C, Cqk, 16, 16)
    out = jax.block_until_ready(
        linear_attention(x, wq, bq, wk, bk, wv, bv, gamma))
    ref = linear_attention_ref(x, wq, bq, wk, bk, wv, bv, gamma)
    assert out.shape == x.shape and out.dtype == x.dtype
    assert _max_err(out, ref) < 2e-4, _max_err(out, ref)

    # Case 3: bf16 I/O path (bf16 operands straight into the MXU).
    x, wq, bq, wk, bk, wv, bv, gamma = _make_inputs(
        k3, 4, C, Cqk, 16, 16, dtype=jnp.bfloat16)
    out = jax.block_until_ready(
        linear_attention(x, wq, bq, wk, bk, wv, bv, gamma))
    ref = linear_attention_ref(x, wq, bq, wk, bk, wv, bv, gamma)
    assert out.shape == x.shape and out.dtype == jnp.bfloat16
    assert _max_err(out, ref) < 1e-1, _max_err(out, ref)

    print("KERNEL_OK")
</pallas_src>

<mosaic_0001>
module attributes {stable_mosaic.version = 11 : i64} {
  func.func @_linear_attn_kernel(%arg0: i32, %arg1: memref<32x512xf32, #tpu.memory_space<vmem>>, %arg2: memref<48x32xf32, #tpu.memory_space<vmem>>, %arg3: memref<48x1xf32, #tpu.memory_space<vmem>>, %arg4: memref<1xf32, #tpu.memory_space<smem>>, %arg5: memref<2x32x256xf32, #tpu.memory_space<vmem>>) attributes {dimension_semantics = [#tpu.dimension_semantics<parallel>], iteration_bounds = array<i64: 1>, scalar_prefetch = 0 : i64, scratch_operands = 0 : i64, tpu.core_type = #tpu.core_type<tc>, window_params = [{transform_indices = @transform_0, window_bounds = array<i64: 32, 512>}, {pipeline_mode = #tpu.pipeline_mode<synchronous>, transform_indices = @transform_1, window_bounds = array<i64: 48, 32>}, {pipeline_mode = #tpu.pipeline_mode<synchronous>, transform_indices = @transform_2, window_bounds = array<i64: 48, 1>}, {transform_indices = @transform_3, window_bounds = array<i64: 1>}, {transform_indices = @transform_4, window_bounds = array<i64: 2, 32, 256>}]} {
    %c0 = arith.constant 0 : index
    %c0_0 = arith.constant 0 : index
    %0 = vector.load %arg2[%c0, %c0_0] : memref<48x32xf32, #tpu.memory_space<vmem>>, vector<48x32xf32>
    %c0_1 = arith.constant 0 : index
    %c0_2 = arith.constant 0 : index
    %1 = vector.load %arg3[%c0_1, %c0_2] : memref<48x1xf32, #tpu.memory_space<vmem>>, vector<48x1xf32>
    %c0_3 = arith.constant 0 : index
    %2 = memref.load %arg4[%c0_3] : memref<1xf32, #tpu.memory_space<smem>>
    %c0_4 = arith.constant 0 : index
    %c0_5 = arith.constant 0 : index
    %3 = vector.load %arg1[%c0_4, %c0_5] : memref<32x512xf32, #tpu.memory_space<vmem>>, vector<32x512xf32>
    %cst = arith.constant dense<0.000000e+00> : vector<48x512xf32>
    %4 = tpu.matmul %0, %3, %cst {dimension_numbers = #tpu.dot_dimension_numbers<[1], [0], [0], [1], [0, 0, 1, 1], [], []>} : vector<48x32xf32>, vector<32x512xf32>, vector<48x512xf32> -> vector<48x512xf32>
    %5 = vector.broadcast %1 : vector<48x1xf32> to vector<48x512xf32>
    %6 = arith.addf %4, %5 : vector<48x512xf32>
    %7 = vector.extract_strided_slice %6 {offsets = [0, 0], sizes = [8, 512], strides = [1, 1]} : vector<48x512xf32> to vector<8x512xf32>
    %8 = vector.extract_strided_slice %6 {offsets = [8, 0], sizes = [8, 512], strides = [1, 1]} : vector<48x512xf32> to vector<8x512xf32>
    %9 = vector.extract_strided_slice %6 {offsets = [16, 0], sizes = [32, 512], strides = [1, 1]} : vector<48x512xf32> to vector<32x512xf32>
    %10 = arith.mulf %7, %7 : vector<8x512xf32>
    %cst_6 = arith.constant dense<0.000000e+00> : vector<512xf32>
    %11 = vector.multi_reduction <add>, %10, %cst_6 [0] : vector<8x512xf32> to vector<512xf32>
    %12 = vector.shape_cast %11 : vector<512xf32> to vector<1x512xf32>
    %13 = math.rsqrt %12 : vector<1x512xf32>
    %14 = vector.broadcast %13 : vector<1x512xf32> to vector<8x512xf32>
    %15 = arith.mulf %7, %14 : vector<8x512xf32>
    %16 = arith.mulf %8, %8 : vector<8x512xf32>
    %cst_7 = arith.constant dense<0.000000e+00> : vector<512xf32>
    %17 = vector.multi_reduction <add>, %16, %cst_7 [0] : vector<8x512xf32> to vector<512xf32>
    %18 = vector.shape_cast %17 : vector<512xf32> to vector<1x512xf32>
    %19 = math.rsqrt %18 : vector<1x512xf32>
    %20 = vector.broadcast %19 : vector<1x512xf32> to vector<8x512xf32>
    %21 = arith.mulf %8, %20 : vector<8x512xf32>
    %22 = tpu.iota {dimensions = array<i32: 0>} : vector<8x1xi32>
    %c4_i32 = arith.constant 4 : i32
    %23 = vector.broadcast %c4_i32 : i32 to vector<8x1xi32>
    %24 = arith.cmpi eq, %22, %23 : vector<8x1xi32>
    %25 = arith.extui %24 : vector<8x1xi1> to vector<8x1xi32>
    %26 = arith.sitofp %25 : vector<8x1xi32> to vector<8x1xf32>
    %27 = vector.broadcast %26 : vector<8x1xf32> to vector<8x512xf32>
    %28 = arith.addf %15, %27 : vector<8x512xf32>
    %29 = vector.broadcast %26 : vector<8x1xf32> to vector<8x512xf32>
    %30 = arith.addf %21, %29 : vector<8x512xf32>
    %31 = vector.extract_strided_slice %15 {offsets = [0, 0], sizes = [8, 256], strides = [1, 1]} : vector<8x512xf32> to vector<8x256xf32>
    %32 = vector.extract_strided_slice %21 {offsets = [0, 0], sizes = [8, 256], strides = [1, 1]} : vector<8x512xf32> to vector<8x256xf32>
    %33 = vector.extract_strided_slice %9 {offsets = [0, 0], sizes = [32, 256], strides = [1, 1]} : vector<32x512xf32> to vector<32x256xf32>
    %cst_8 = arith.constant dense<0.000000e+00> : vector<8xf32>
    %34 = vector.multi_reduction <add>, %32, %cst_8 [1] : vector<8x256xf32> to vector<8xf32>
    %35 = vector.shape_cast %34 : vector<8xf32> to vector<8x1xf32>
    %cst_9 = arith.constant 9.99999997E-7 : f32
    %36 = vector.broadcast %cst_9 : f32 to vector<8x1xf32>
    %37 = arith.addf %35, %36 : vector<8x1xf32>
    %38 = vector.broadcast %37 : vector<8x1xf32> to vector<8x256xf32>
    %39 = arith.mulf %31, %38 : vector<8x256xf32>
    %cst_10 = arith.constant dense<0.000000e+00> : vector<256xf32>
    %40 = vector.multi_reduction <add>, %39, %cst_10 [0] : vector<8x256xf32> to vector<256xf32>
    %41 = vector.shape_cast %40 : vector<256xf32> to vector<1x256xf32>
    %cst_11 = arith.constant 2.560000e+02 : f32
    %42 = vector.broadcast %cst_11 : f32 to vector<1x256xf32>
    %43 = arith.addf %42, %41 : vector<1x256xf32>
    %44 = tpu.reciprocal %43 : vector<1x256xf32> -> vector<1x256xf32>
    %45 = vector.extract_strided_slice %30 {offsets = [0, 0], sizes = [8, 256], strides = [1, 1]} : vector<8x512xf32> to vector<8x256xf32>
    %cst_12 = arith.constant dense<0.000000e+00> : vector<8x32xf32>
    %46 = tpu.matmul %45, %33, %cst_12 {dimension_numbers = #tpu.dot_dimension_numbers<[1], [1], [0], [0], [0, 0, 1, 0], [], []>} : vector<8x256xf32>, vector<32x256xf32>, vector<8x32xf32> -> vector<8x32xf32>
    %47 = vector.extract_strided_slice %28 {offsets = [0, 0], sizes = [8, 256], strides = [1, 1]} : vector<8x512xf32> to vector<8x256xf32>
    %cst_13 = arith.constant dense<0.000000e+00> : vector<32x256xf32>
    %48 = tpu.matmul %46, %47, %cst_13 {dimension_numbers = #tpu.dot_dimension_numbers<[0], [0], [1], [1], [0, 1, 1, 1], [], []>} : vector<8x32xf32>, vector<8x256xf32>, vector<32x256xf32> -> vector<32x256xf32>
    %49 = vector.extract_strided_slice %3 {offsets = [0, 0], sizes = [32, 256], strides = [1, 1]} : vector<32x512xf32> to vector<32x256xf32>
    %50 = vector.broadcast %44 : vector<1x256xf32> to vector<32x256xf32>
    %51 = arith.mulf %48, %50 : vector<32x256xf32>
    %52 = vector.broadcast %2 : f32 to vector<32x256xf32>
    %53 = arith.mulf %52, %51 : vector<32x256xf32>
    %54 = arith.addf %49, %53 : vector<32x256xf32>
    %c0_14 = arith.constant 0 : index
    %c0_15 = arith.constant 0 : index
    %c0_16 = arith.constant 0 : index
    %55 = vector.load %arg5[%c0_14, %c0_15, %c0_16] : memref<2x32x256xf32, #tpu.memory_space<vmem>>, vector<1x32x256xf32>
    %56 = vector.shape_cast %55 : vector<1x32x256xf32> to vector<32x256xf32>
    %57 = vector.shape_cast %54 : vector<32x256xf32> to vector<1x32x256xf32>
    tpu.vector_store %arg5[%c0_14, %c0_15, %c0_16], %57 {strides = array<i32>} : memref<2x32x256xf32, #tpu.memory_space<vmem>>, vector<1x32x256xf32>,
    %58 = vector.extract_strided_slice %15 {offsets = [0, 256], sizes = [8, 256], strides = [1, 1]} : vector<8x512xf32> to vector<8x256xf32>
    %59 = vector.extract_strided_slice %21 {offsets = [0, 256], sizes = [8, 256], strides = [1, 1]} : vector<8x512xf32> to vector<8x256xf32>
    %60 = vector.extract_strided_slice %9 {offsets = [0, 256], sizes = [32, 256], strides = [1, 1]} : vector<32x512xf32> to vector<32x256xf32>
    %cst_17 = arith.constant dense<0.000000e+00> : vector<8xf32>
    %61 = vector.multi_reduction <add>, %59, %cst_17 [1] : vector<8x256xf32> to vector<8xf32>
    %62 = vector.shape_cast %61 : vector<8xf32> to vector<8x1xf32>
    %cst_18 = arith.constant 9.99999997E-7 : f32
    %63 = vector.broadcast %cst_18 : f32 to vector<8x1xf32>
    %64 = arith.addf %62, %63 : vector<8x1xf32>
    %65 = vector.broadcast %64 : vector<8x1xf32> to vector<8x256xf32>
    %66 = arith.mulf %58, %65 : vector<8x256xf32>
    %cst_19 = arith.constant dense<0.000000e+00> : vector<256xf32>
    %67 = vector.multi_reduction <add>, %66, %cst_19 [0] : vector<8x256xf32> to vector<256xf32>
    %68 = vector.shape_cast %67 : vector<256xf32> to vector<1x256xf32>
    %cst_20 = arith.constant 2.560000e+02 : f32
    %69 = vector.broadcast %cst_20 : f32 to vector<1x256xf32>
    %70 = arith.addf %69, %68 : vector<1x256xf32>
    %71 = tpu.reciprocal %70 : vector<1x256xf32> -> vector<1x256xf32>
    %72 = vector.extract_strided_slice %30 {offsets = [0, 256], sizes = [8, 256], strides = [1, 1]} : vector<8x512xf32> to vector<8x256xf32>
    %cst_21 = arith.constant dense<0.000000e+00> : vector<8x32xf32>
    %73 = tpu.matmul %72, %60, %cst_21 {dimension_numbers = #tpu.dot_dimension_numbers<[1], [1], [0], [0], [0, 0, 1, 0], [], []>} : vector<8x256xf32>, vector<32x256xf32>, vector<8x32xf32> -> vector<8x32xf32>
    %74 = vector.extract_strided_slice %28 {offsets = [0, 256], sizes = [8, 256], strides = [1, 1]} : vector<8x512xf32> to vector<8x256xf32>
    %cst_22 = arith.constant dense<0.000000e+00> : vector<32x256xf32>
    %75 = tpu.matmul %73, %74, %cst_22 {dimension_numbers = #tpu.dot_dimension_numbers<[0], [0], [1], [1], [0, 1, 1, 1], [], []>} : vector<8x32xf32>, vector<8x256xf32>, vector<32x256xf32> -> vector<32x256xf32>
    %76 = vector.extract_strided_slice %3 {offsets = [0, 256], sizes = [32, 256], strides = [1, 1]} : vector<32x512xf32> to vector<32x256xf32>
    %77 = vector.broadcast %71 : vector<1x256xf32> to vector<32x256xf32>
    %78 = arith.mulf %75, %77 : vector<32x256xf32>
    %79 = vector.broadcast %2 : f32 to vector<32x256xf32>
    %80 = arith.mulf %79, %78 : vector<32x256xf32>
    %81 = arith.addf %76, %80 : vector<32x256xf32>
    %c1 = arith.constant 1 : index
    %c0_23 = arith.constant 0 : index
    %c0_24 = arith.constant 0 : index
    %82 = vector.load %arg5[%c1, %c0_23, %c0_24] : memref<2x32x256xf32, #tpu.memory_space<vmem>>, vector<1x32x256xf32>
    %83 = vector.shape_cast %82 : vector<1x32x256xf32> to vector<32x256xf32>
    %84 = vector.shape_cast %81 : vector<32x256xf32> to vector<1x32x256xf32>
    tpu.vector_store %arg5[%c1, %c0_23, %c0_24], %84 {strides = array<i32>} : memref<2x32x256xf32, #tpu.memory_space<vmem>>, vector<1x32x256xf32>,
    return
  }
  func.func @transform_0(%arg0: i32) -> (i32, i32) {
    %c0_i32 = arith.constant 0 : i32
    %c0_i32_0 = arith.constant 0 : i32
    return %c0_i32, %arg0 : i32, i32
  }
  func.func @transform_1(%arg0: i32) -> (i32, i32) {
    %c0_i32 = arith.constant 0 : i32
    %c0_i32_0 = arith.constant 0 : i32
    %c0_i32_1 = arith.constant 0 : i32
    return %c0_i32, %c0_i32_0 : i32, i32
  }
  func.func @transform_2(%arg0: i32) -> (i32, i32) {
    %c0_i32 = arith.constant 0 : i32
    %c0_i32_0 = arith.constant 0 : i32
    %c0_i32_1 = arith.constant 0 : i32
    return %c0_i32, %c0_i32_0 : i32, i32
  }
  func.func @transform_3(%arg0: i32) -> i32 {
    %c0_i32 = arith.constant 0 : i32
    %c0_i32_0 = arith.constant 0 : i32
    return %c0_i32 : i32
  }
  func.func @transform_4(%arg0: i32) -> (i32, i32, i32) {
    %c0_i32 = arith.constant 0 : i32
    %c0_i32_0 = arith.constant 0 : i32
    %c0_i32_1 = arith.constant 0 : i32
    return %arg0, %c0_i32, %c0_i32_0 : i32, i32, i32
  }
}

</mosaic_0001>

<bundles_post_ra>
// kernel: tpu_custom_call.1
= control target key start
LH: loop header
LB: loop body
LE: loop exit
PB: predicated region body
PF: predicated region fallthrough
CT: control target
= control target key end

     0   :  { %vm78_vm0 = vcmask 261120   ;;  %s1517_s0 = inlined_call_operand.vmem [shape: f32[32,512], index: 0, kind: input, shape index: {}]   ;;  %s1518_s1 = inlined_call_operand.vmem [shape: f32[48,32], index: 1, kind: input, shape index: {}]   ;;  %s1519_s2 = inlined_call_operand.vmem [shape: f32[48,1], index: 2, kind: input, shape index: {}]   ;;  %s1520_s3 = inlined_call_operand.<no memory space> [shape: f32[1], index: 3, kind: input, shape index: {}]   ;;  %s1521_s4 = inlined_call_operand.hbm [shape: f32[2,32,256], index: 4, kind: output, shape index: {}]  }
   0x1   :  { %v44_v0 = vld [vmem:[%s1517_s0 + $0x60] sm:$0xff]  ;;  %v45_v1 = vld [vmem:[%s1517_s0 + $0x68] sm:$0xff]  ;;  %v46_v2 = vld [vmem:[%s1517_s0 + $0x70] sm:$0xff] }
   0x2   :  { %109 = vmatpush.msra.mxu0 %v44_v0  ;;  %144 = vmatpush.msra.mxu1 %v45_v1  ;;  %v47_v3 = vld [vmem:[%s1517_s0 + $0x78] sm:$0xff]  ;;  %v40_v4 = vld [vmem:[%s1517_s0 + $0x40] sm:$0xff]  ;;  %v41_v5 = vld [vmem:[%s1517_s0 + $0x48] sm:$0xff] }
   0x3   :  { %179 = vmatpush.msra.mxu2 %v46_v2  ;;  %214 = vmatpush.msra.mxu3 %v47_v3  ;;  %v1015_v6 = vld [vmem:[%s1517_s0 + $0x50] sm:$0xff]  ;;  %v1020_v7 = vld [vmem:[%s1517_s0 + $0x58] sm:$0xff]  ;;  %v1025_v8 = vld [vmem:[%s1517_s0 + $0x20] sm:$0xff] }
   0x4   :  { %1524 = vst [vmem:[#allocation6_spill] sm:$0xff] %v1015_v6  ;;  %110 = vmatpush.msra.mxu0 %v40_v4  ;;  %145 = vmatpush.msra.mxu1 %v41_v5  ;;  %v1030_v9 = vld [vmem:[%s1517_s0 + $0x28] sm:$0xff]  ;;  %v1035_v10 = vld [vmem:[%s1517_s0 + $0x30] sm:$0xff]  ;;  %v1040_v11 = vld [vmem:[%s1517_s0 + $0x38] sm:$0xff] }
   0x5   :  { %1525 = vst [vmem:[#allocation7_spill] sm:$0xff] %v1020_v7  ;;  %180 = vmatpush.msra.mxu2 %v1015_v6  ;;  %215 = vmatpush.msra.mxu3 %v1020_v7  ;;  %v1047_v12 = vld [vmem:[%s1517_s0] sm:$0xff]  ;;  %v1052_v13 = vld [vmem:[%s1517_s0 + $0x8] sm:$0xff]  ;;  %v1059_v14 = vld [vmem:[%s1517_s0 + $0x10] sm:$0xff] }
   0x6   :  { %111 = vmatpush.msra.mxu0 %v1025_v8  ;;  %146 = vmatpush.msra.mxu1 %v1030_v9  ;;  %v1064_v15 = vld [vmem:[%s1517_s0 + $0x18] sm:$0xff]  ;;  %v19_v16 = vld [vmem:[%s1518_s1] sm:$0xff] }
   0x7   :  { %181 = vmatpush.msra.mxu2 %v1035_v10  ;;  %216 = vmatpush.msra.mxu3 %v1040_v11 }
   0x8   :  { %112 = vmatpush.msra.mxu0 %v1047_v12  ;;  %147 = vmatpush.msra.mxu1 %v1052_v13 }
   0x9   :  { %182 = vmatpush.msra.mxu2 %v1059_v14  ;;  %217 = vmatpush.msra.mxu3 %v1064_v15 }
   0xa   :  { %10 = vsyncpa [#allocation4], 0  ;;  %859 = vmatmul.msk.f32.vlgmr.msra.gmra.mxu0 %vm78_vm0, %v19_v16  ;;  %865 = vmatmul.msk.f32.vlgmr.msra.gmra.mxu1 %vm78_vm0, %v19_v16  ;;  %v26_v17 = vld [vmem:[%s1519_s2 + $0x8] sm:$0xff]  ;;  %v29_v18 = vld [vmem:[%s1519_s2 + $0x20] sm:$0xff]  ;;  %v964_v20 = vmov 0   ;;  %s966_s26 = smov [#allocation3]  }
   0xb   :  { %871 = vmatmul.msk.f32.vlgmr.msra.gmra.mxu2 %vm78_vm0, %v19_v16  ;;  %877 = vmatmul.msk.f32.vlgmr.msra.gmra.mxu3 %vm78_vm0, %v19_v16  ;;  %v27_v19 = vld [vmem:[%s1519_s2 + $0x10] sm:$0xff]  ;;  %v20_v21 = vld [vmem:[%s1518_s1 + $0x8] sm:$0xff]  ;;  %v28_v23 = vld [vmem:[%s1519_s2 + $0x18] sm:$0xff]  ;;  %s845_s27 = sshll.u32 %s966_s26, 4  ;;  %s847_s30 = sshll.u32 %s1521_s4, 4  ;;  %s846_s27 = int_to_ptr.vmem [resolvable:$true] %s845_s27  ;;  %s848_s30 = int_to_ptr.hbm [resolvable:$true] %s847_s30 }
   0xc   :  { %905 = vset.pattern.permute.xlu0 %v964_v20  ;;  %907 = vset.pattern.permute.xlu2 %v964_v20  ;;  %v30_v22 = vld [vmem:[%s1519_s2 + $0x28] sm:$0xff]  ;;  %v25_v24 = vld [vmem:[%s1519_s2] sm:$0xff]  ;;  %v21_v25 = vld [vmem:[%s1518_s1 + $0x10] sm:$0xff]  ;;  %s967_s9 = smov 256   ;;  %s968_s4 = smov 16  }
   0xd   :  { %55 = vperm.xlu0 %905, %v26_v17   ;;  %906 = vset.pattern.permute.xlu1 %v964_v20  ;;  %v22_v26 = vld [vmem:[%s1518_s1 + $0x18] sm:$0xff]  ;;  %v23_v27 = vld [vmem:[%s1518_s1 + $0x20] sm:$0xff]  ;;  %v24_v28 = vld [vmem:[%s1518_s1 + $0x28] sm:$0xff] }
   0xe   :  { %70 = vperm.xlu1 %906, %v29_v18   ;;  %60 = vperm.xlu2 %907, %v27_v19  }
  0x12   :  { %860 = vmatmul.msk.f32.gmra.mxu0 %vm78_vm0, %v20_v21  ;;  %866 = vmatmul.msk.f32.gmra.mxu1 %vm78_vm0, %v20_v21 }
  0x13   :  { %872 = vmatmul.msk.f32.gmra.mxu2 %vm78_vm0, %v20_v21  ;;  %878 = vmatmul.msk.f32.gmra.mxu3 %vm78_vm0, %v20_v21 }
  0x15   :  { %75 = vperm.xlu0 %905, %v30_v22  }
  0x16   :  { %65 = vperm.xlu1 %906, %v28_v23   ;;  %50 = vperm.xlu2 %907, %v25_v24  }
  0x1a   :  { %861 = vmatmul.msk.f32.gmra.mxu0 %vm78_vm0, %v21_v25  ;;  %867 = vmatmul.msk.f32.gmra.mxu1 %vm78_vm0, %v21_v25 }
  0x1b   :  { %873 = vmatmul.msk.f32.gmra.mxu2 %vm78_vm0, %v21_v25  ;;  %879 = vmatmul.msk.f32.gmra.mxu3 %vm78_vm0, %v21_v25 }
  0x22   :  { %862 = vmatmul.msk.f32.gmra.mxu0 %vm78_vm0, %v22_v26  ;;  %868 = vmatmul.msk.f32.gmra.mxu1 %vm78_vm0, %v22_v26 }
  0x23   :  { %874 = vmatmul.msk.f32.gmra.mxu2 %vm78_vm0, %v22_v26  ;;  %880 = vmatmul.msk.f32.gmra.mxu3 %vm78_vm0, %v22_v26 }
  0x2a   :  { %863 = vmatmul.msk.f32.gmra.mxu0 %vm78_vm0, %v23_v27  ;;  %869 = vmatmul.msk.f32.gmra.mxu1 %vm78_vm0, %v23_v27 }
  0x2b   :  { %875 = vmatmul.msk.f32.gmra.mxu2 %vm78_vm0, %v23_v27  ;;  %881 = vmatmul.msk.f32.gmra.mxu3 %vm78_vm0, %v23_v27 }
  0x32   :  { %864 = vmatmul.msk.f32.gmra.mxu0 %vm78_vm0, %v24_v28  ;;  %870 = vmatmul.msk.f32.gmra.mxu1 %vm78_vm0, %v24_v28 }
  0x33   :  { %876 = vmatmul.msk.f32.gmra.mxu2 %vm78_vm0, %v24_v28  ;;  %882 = vmatmul.msk.f32.gmra.mxu3 %vm78_vm0, %v24_v28 }
  0x68   :  { %v1132_v29 = vpop.permute.xlu2 %60 }
  0x70   :  { %v51_v30 = vpop.permute.xlu2 %50 }
  0x7f   :  { %v56_v39 = vpop.permute.xlu0 %55 }
  0x87   :  { %v114_v31 = vpop.f32.mrf.mxu0  ;;  %v149_v32 = vpop.f32.mrf.mxu1 }
  0x88   :  { %v1134_v33 = vadd.f32 %v114_v31, %v51_v30  ;;  %v1136_v34 = vadd.f32 %v149_v32, %v51_v30 }
  0x8a   :  { %v237_v35 = vmul.f32 %v1134_v33, %v1134_v33  ;;  %v238_v36 = vmul.f32 %v1136_v34, %v1136_v34 }
  0x8c   :  { %v241_v37 = vrot.slane %v237_v35, 4  ;;  %v247_v38 = vrot.slane %v238_v36, 4 }
  0x8e   :  { %v242_v40 = vadd.f32 %v241_v37, %v237_v35  ;;  %v248_v41 = vadd.f32 %v247_v38, %v238_v36  ;;  %v184_v42 = vpop.f32.mrf.mxu2  ;;  %v219_v43 = vpop.f32.mrf.mxu3 }
  0x8f   :  { %v1142_v44 = vadd.f32 %v184_v42, %v51_v30  ;;  %v1144_v45 = vadd.f32 %v219_v43, %v51_v30  ;;  %v117_v46 = vpop.f32.mrf.mxu0  ;;  %v152_v47 = vpop.f32.mrf.mxu1 }
  0x90   :  { %v243_v48 = vrot.slane %v242_v40, 2  ;;  %v249_v49 = vrot.slane %v248_v41, 2  ;;  %v1146_v50 = vadd.f32 %v117_v46, %v56_v39  ;;  %v1148_v51 = vadd.f32 %v152_v47, %v56_v39 }
  0x91   :  { %v239_v52 = vmul.f32 %v1142_v44, %v1142_v44  ;;  %v240_v53 = vmul.f32 %v1144_v45, %v1144_v45 }
  0x92   :  { %v244_v54 = vadd.f32 %v243_v48, %v242_v40  ;;  %v250_v55 = vadd.f32 %v249_v49, %v248_v41  ;;  %v309_v56 = vmul.f32 %v1146_v50, %v1146_v50  ;;  %v310_v57 = vmul.f32 %v1148_v51, %v1148_v51 }
  0x93   :  { %v253_v58 = vrot.slane %v239_v52, 4  ;;  %v259_v59 = vrot.slane %v240_v53, 4 }
  0x94   :  { %v245_v60 = vrot.slane %v244_v54, 1  ;;  %v251_v61 = vrot.slane %v250_v55, 1  ;;  %v313_v62 = vrot.slane %v309_v56, 4  ;;  %v319_v63 = vrot.slane %v310_v57, 4 }
  0x95   :  { %v254_v0 = vadd.f32 %v253_v58, %v239_v52  ;;  %v260_v1 = vadd.f32 %v259_v59, %v240_v53 }
  0x96   :  { %v1158_v2 = vadd.f32 %v245_v60, %v244_v54  ;;  %v1160_v3 = vadd.f32 %v251_v61, %v250_v55  ;;  %v314_v4 = vadd.f32 %v313_v62, %v309_v56  ;;  %v320_v5 = vadd.f32 %v319_v63, %v310_v57  ;;  %v187_v16 = vpop.f32.mrf.mxu2  ;;  %v222_v17 = vpop.f32.mrf.mxu3 }
  0x97   :  { %v255_v18 = vrot.slane %v254_v0, 2  ;;  %v261_v19 = vrot.slane %v260_v1, 2  ;;  %v1162_v20 = vadd.f32 %v187_v16, %v56_v39  ;;  %v1164_v21 = vadd.f32 %v222_v17, %v56_v39  ;;  %v1166_v22 = vpop.f32.mrf.mxu0  ;;  %v1168_v23 = vpop.f32.mrf.mxu1 }
  0x98   :  { %908 = vrsqrt.f32 %v1158_v2  ;;  %v315_v24 = vrot.slane %v314_v4, 2  ;;  %v321_v27 = vrot.slane %v320_v5, 2  ;;  %vm271_vm2 = vweird.f32 %v1158_v2 }
  0x99   :  { %v256_v25 = vadd.f32 %v255_v18, %v254_v0  ;;  %v262_v26 = vadd.f32 %v261_v19, %v260_v1  ;;  %v311_v30 = vmul.f32 %v1162_v20, %v1162_v20  ;;  %v312_v31 = vmul.f32 %v1164_v21, %v1164_v21  ;;  %v1207_v1 = vpop.permute.xlu1 %70 }
  0x9a   :  { %v316_v28 = vadd.f32 %v315_v24, %v314_v4  ;;  %910 = vrsqrt.f32 %v1160_v3  ;;  %v322_v36 = vadd.f32 %v321_v27, %v320_v5  ;;  %vm281_vm3 = vweird.f32 %v1160_v3 }
  0x9b   :  { %v257_v32 = vrot.slane %v256_v25, 1  ;;  %v263_v35 = vrot.slane %v262_v26, 1  ;;  %v325_v38 = vrot.slane %v311_v30, 4  ;;  %v331_v39 = vrot.slane %v312_v31, 4 }
  0x9c   :  { %v317_v37 = vrot.slane %v316_v28, 1  ;;  %v323_v42 = vrot.slane %v322_v36, 1 }
  0x9d   :  { %v1176_v40 = vadd.f32 %v257_v32, %v256_v25  ;;  %v1178_v41 = vadd.f32 %v263_v35, %v262_v26  ;;  %v326_v47 = vadd.f32 %v325_v38, %v311_v30  ;;  %v332_v48 = vadd.f32 %v331_v39, %v312_v31 }
  0x9e   :  { %v1180_v43 = vpop.eup %908  ;;  %v1182_v46 = vadd.f32 %v317_v37, %v316_v28  ;;  %v1184_v49 = vpop.f32.mrf.mxu2  ;;  %v1199_v57 = vadd.f32 %v323_v42, %v322_v36  ;;  %v381_v31 = vlaneseq }
  0x9f   :  { %v1186_v52 = vpop.f32.mrf.mxu3  ;;  %912 = vrsqrt.f32 %v1176_v40  ;;  %v1189_v53 = vpop.f32.mrf.mxu0  ;;  %v266_v56 = vmul.f32 %v1180_v43, %v1158_v2  ;;  %v327_v58 = vrot.slane %v326_v47, 2  ;;  %v333_v59 = vrot.slane %v332_v48, 2 }
  0xa0   :  { %v1191_v54 = vpop.f32.mrf.mxu1  ;;  %914 = vrsqrt.f32 %v1178_v41  ;;  %v1194_v55 = vpop.eup %910  ;;  %vm272_vm4 = vweird.f32 %v1180_v43  ;;  %vm343_vm5 = vweird.f32 %v1182_v46  ;;  %vm291_vm10 = vweird.f32 %v1176_v40 }
  0xa1   :  { %916 = vrsqrt.f32 %v1182_v46  ;;  %v276_v60 = vmul.f32 %v1194_v55, %v1160_v3  ;;  %v328_v61 = vadd.f32 %v327_v58, %v326_v47  ;;  %v334_v62 = vadd.f32 %v333_v59, %v332_v48  ;;  %vm1283_vm14 = vmor %vm271_vm2, %vm272_vm4 }
  0xa2   :  { %918 = vrsqrt.f32 %v1199_v57  ;;  %v267_v0 = vmul.f32 %v1180_v43, %v266_v56  ;;  %v1234_v56 = vshrl.u32 %v381_v31, 7  ;;  %vm282_vm7 = vweird.f32 %v1194_v55 }
  0xa3   :  { %v329_v5 = vrot.slane %v328_v61, 1  ;;  %v335_v19 = vrot.slane %v334_v62, 1  ;;  %v277_v26 = vmul.f32 %v1194_v55, %v276_v60  ;;  %vm353_vm11 = vweird.f32 %v1199_v57  ;;  %vm1303_vm15 = vmor %vm281_vm3, %vm282_vm7 }
  0xa4   :  { %v268_v30 = vmul.f32 0.5, %v267_v0  ;;  %vm383_vm6 = vcmp.eq.s32.totalorder %v1234_v56, 4 }
  0xa5   :  { %v1204_v63 = vpop.eup %912  ;;  %v1225_v35 = vadd.f32 %v329_v5, %v328_v61  ;;  %v1229_v38 = vadd.f32 %v335_v19, %v334_v62  ;;  %v278_v42 = vmul.f32 0.5, %v277_v26 }
  0xa6   :  { %v1209_v4 = vpop.eup %914  ;;  %v1211_v16 = vpop.f32.mrf.mxu2  ;;  %v286_v32 = vmul.f32 %v1204_v63, %v1176_v40  ;;  %v269_v48 = vsub.f32 1.5, %v268_v30  ;;  %vm292_vm12 = vweird.f32 %v1204_v63 }
  0xa7   :  { %v1213_v17 = vpop.f32.mrf.mxu3  ;;  %v917_v18 = vpop.eup %916  ;;  %v296_v36 = vmul.f32 %v1209_v4, %v1178_v41  ;;  %920 = vrsqrt.f32 %v1225_v35  ;;  %v279_v26 = vsub.f32 1.5, %v278_v42  ;;  %vm302_vm0 = vweird.f32 %v1209_v4  ;;  %vm1329_vm3 = vmor %vm291_vm10, %vm292_vm12 }
  0xa8   :  { %v1215_v24 = vpop.f32.mrf.mxu0  ;;  %v1217_v25 = vpop.f32.mrf.mxu1  ;;  %v338_v27 = vmul.f32 %v917_v18, %v1182_v46  ;;  %v287_v58 = vmul.f32 %v1204_v63, %v286_v32  ;;  %vm344_vm1 = vweird.f32 %v917_v18  ;;  %922 = vrsqrt.f32 %v1229_v38 }
  0xa9   :  { %v1221_v28 = vpop.eup %918  ;;  %v297_v60 = vmul.f32 %v1209_v4, %v296_v36  ;;  %v1248_v30 = vpop.permute.xlu1 %65  ;;  %vm1253_vm8 = vmor %vm343_vm5, %vm344_vm1  ;;  %v270_v46 = vmul.f32 %v1180_v43, %v269_v48  ;;  %v280_v48 = vmul.f32 %v1194_v55, %v279_v26  ;;  %v127_v2 = vadd.f32 %v1215_v24, %v1207_v1 }
  0xaa   :  { %v339_v37 = vmul.f32 %v917_v18, %v338_v27  ;;  %v348_v39 = vmul.f32 %v1221_v28, %v1199_v57  ;;  %v288_v31 = vmul.f32 0.5, %v287_v58  ;;  %vm354_vm9 = vweird.f32 %v1221_v28 }
  0xab   :  { %v124_v7 = vadd.f32 %v1189_v53, %v1248_v30  ;;  %vm355_vm13 = vmor %vm353_vm11, %vm354_vm9  ;;  %v284_v24 = vsel %vm1303_vm15, %v1194_v55, %v280_v48  ;;  %vm363_vm2 = vweird.f32 %v1225_v35  ;;  %v965_v53 = vmov 0.0  }
  0xac   :  { %v340_v47 = vmul.f32 0.5, %v339_v37  ;;  %v349_v59 = vmul.f32 %v1221_v28, %v348_v39  ;;  %v76_v37 = vpop.permute.xlu0 %75  ;;  %v289_v57 = vsub.f32 1.5, %v288_v31  ;;  %vm301_vm5 = vweird.f32 %v1178_v41 }
  0xad   :  { %v1258_v42 = vpop.eup %920  ;;  %v159_v40 = vadd.f32 %v1191_v54, %v1248_v30  ;;  %vm514_vm10 = vcmask 64512  }
  0xae   :  { %v341_v61 = vsub.f32 1.5, %v340_v47  ;;  %v1240_v62 = vpop.f32.mrf.mxu2  ;;  %v350_v5 = vmul.f32 0.5, %v349_v59  ;;  %v298_v47 = vmul.f32 0.5, %v297_v60  ;;  %v1270_v6 = vpop.eup %922  ;;  %vm364_vm1 = vweird.f32 %v1258_v42 }
  0xaf   :  { %v1242_v0 = vpop.f32.mrf.mxu3  ;;  %vm374_vm4 = vweird.f32 %v1270_v6  ;;  %vm365_vm7 = vmor %vm363_vm2, %vm364_vm1 }
  0xb0   :  { %v129_v19 = vpop.f32.mrf.mxu0  ;;  %v342_v27 = vmul.f32 %v917_v18, %v341_v61  ;;  %v351_v36 = vsub.f32 1.5, %v350_v5  ;;  %v164_v39 = vpop.f32.mrf.mxu1  ;;  %v358_v5 = vmul.f32 %v1258_v42, %v1225_v35  ;;  %v299_v32 = vsub.f32 1.5, %v298_v47 }
  0xb1   :  { %v130_v59 = vadd.f32 %v129_v19, %v76_v37  ;;  %v162_v47 = vadd.f32 %v1217_v25, %v1207_v1  ;;  %v197_v25 = vadd.f32 %v1240_v62, %v1207_v1  ;;  %v232_v35 = vadd.f32 %v1242_v0, %v1207_v1 }
  0xb2   :  { %v346_v58 = vsel %vm1253_vm8, %v917_v18, %v342_v27  ;;  %v352_v61 = vmul.f32 %v1221_v28, %v351_v36  ;;  %v165_v18 = vadd.f32 %v164_v39, %v76_v37  ;;  %v359_v26 = vmul.f32 %v1258_v42, %v358_v5  ;;  %vm1352_vm8 = vmor %vm301_vm5, %vm302_vm0 }
  0xb3   :  { %v1275_v60 = vmul.f32 %v346_v58, %v1146_v50  ;;  %454 = vmatpush.xpose.msrb.mxu2 %v130_v59  ;;  %v368_v50 = vmul.f32 %v1270_v6, %v1229_v38  ;;  %v274_v27 = vsel %vm1283_vm14, %v1180_v43, %v270_v46  ;;  %v290_v59 = vmul.f32 %v1204_v63, %v289_v57 }
  0xb4   :  { %v356_v19 = vsel %vm355_vm13, %v1221_v28, %v352_v61  ;;  %474 = vmatpush.xpose.msrb.mxu3 %v165_v18  ;;  %v360_v58 = vmul.f32 0.5, %v359_v26  ;;  %v300_v55 = vmul.f32 %v1209_v4, %v299_v32  ;;  %v883_v62 = vsel %vm383_vm6, 1.0, %v965_v53 }
  0xb5   :  { %v1295_v36 = vmul.f32 %v356_v19, %v1148_v51  ;;  %v369_v43 = vmul.f32 %v1270_v6, %v368_v50  ;;  %v1340_v57 = vmul.f32 %v284_v24, %v1136_v34  ;;  %v294_v1 = vsel %vm1329_vm3, %v1204_v63, %v290_v59 }
  0xb6   :  { %v199_v31 = vpop.f32.mrf.mxu2  ;;  %v361_v61 = vsub.f32 1.5, %v360_v58  ;;  %vm373_vm6 = vweird.f32 %v1229_v38  ;;  %v121_v63 = vadd.f32 %v1166_v22, %v1132_v29  ;;  %v194_v38 = vadd.f32 %v1211_v16, %v1248_v30 }
  0xb7   :  { %v234_v39 = vpop.f32.mrf.mxu3  ;;  %v200_v46 = vadd.f32 %v199_v31, %v76_v37  ;;  %455 = vmatpush.xpose.msrb.mxu2 %v127_v2  ;;  %v394_v3 = vadd.f32 %v1295_v36, %v1275_v60  ;;  %v370_v5 = vmul.f32 0.5, %v369_v43  ;;  %vm375_vm9 = vmor %vm373_vm6, %vm374_vm4  ;;  %v1372_v19 = vmul.f32 %v294_v1, %v1142_v44 }
  0xb8   :  { %v235_v51 = vadd.f32 %v234_v39, %v76_v37  ;;  %v1319_v37 = vmul.f32 %v274_v27, %v1134_v33  ;;  %475 = vmatpush.xpose.msrb.mxu3 %v162_v47  ;;  %v362_v33 = vmul.f32 %v1258_v42, %v361_v61  ;;  %v229_v26 = vadd.f32 %v1213_v17, %v1248_v30 }
  0xb9   :  { %678 = vmatpush.xpose.msrb.mxu0 %v200_v46  ;;  %395 = vadd.xlane.f32.xlu2 %v394_v3  ;;  %v371_v18 = vsub.f32 1.5, %v370_v5  ;;  %v387_v22 = vadd.f32 %v883_v62, %v1340_v57  ;;  %v388_v16 = vadd.f32 %v883_v62, %v1372_v19 }
  0xba   :  { %698 = vmatpush.xpose.msrb.mxu1 %v235_v51  ;;  %v366_v34 = vsel %vm365_vm7, %v1258_v42, %v362_v33  ;;  %v386_v0 = vadd.f32 %v883_v62, %v1319_v37 }
  0xbb   :  { %456 = vmatpush.xpose.msrb.mxu2 %v124_v7  ;;  %v372_v41 = vmul.f32 %v1270_v6, %v371_v18  ;;  %v304_v7 = vsel %vm1352_vm8, %v1209_v4, %v300_v55  ;;  %v379_v54 = vmul.f32 %v366_v34, %v1162_v20  ;;  %v156_v20 = vadd.f32 %v1168_v23, %v1132_v29 }
  0xbc   :  { %476 = vmatpush.xpose.msrb.mxu3 %v159_v40  ;;  %v1381_v50 = vmul.f32 %v304_v7, %v1144_v45  ;;  %v391_v23 = vadd.f32 %v883_v62, %v1295_v36  ;;  %v226_v45 = vadd.f32 %v1186_v52, %v1132_v29 }
  0xbd   :  { %679 = vmatpush.xpose.msrb.mxu0 %v197_v25  ;;  %v376_v42 = vsel %vm375_vm9, %v1270_v6, %v372_v41  ;;  %v390_v6 = vadd.f32 %v883_v62, %v1275_v60  ;;  %v392_v30 = vadd.f32 %v883_v62, %v379_v54 }
  0xbe   :  { %699 = vmatpush.xpose.msrb.mxu1 %v232_v35  ;;  %v380_v4 = vmul.f32 %v376_v42, %v1164_v21  ;;  %v191_v21 = vadd.f32 %v1184_v49, %v1132_v29  ;;  %v389_v17 = vadd.f32 %v883_v62, %v1381_v50 }
  0xbf   :  { %457 = vmatpush.xpose.msrb.mxu2 %v121_v63 }
  0xc0   :  { %477 = vmatpush.xpose.msrb.mxu3 %v156_v20  ;;  %v618_v44 = vadd.f32 %v380_v4, %v379_v54  ;;  %v393_v60 = vadd.f32 %v883_v62, %v380_v4 }
  0xc1   :  { %680 = vmatpush.xpose.msrb.mxu0 %v194_v38 }
  0xc2   :  { %700 = vmatpush.xpose.msrb.mxu1 %v229_v26  ;;  %458 = vmatmul.f32.vlgmr.msrb.gmra.mxu2 %v390_v6 }
  0xc3   :  { %542 = vmatpush.msra.mxu2 %v386_v0  ;;  %478 = vmatmul.f32.vlgmr.msrb.gmra.mxu3 %v391_v23 }
  0xc4   :  { %571 = vmatpush.msra.mxu3 %v387_v22 }
  0xc5   :  { %681 = vmatpush.xpose.msrb.mxu0 %v191_v21 }
  0xc6   :  { %701 = vmatpush.xpose.msrb.mxu1 %v226_v45 }
  0xc8   :  { %682 = vmatmul.f32.vlgmr.msrb.gmra.mxu0 %v392_v30 }
  0xc9   :  { %765 = vmatpush.msra.mxu0 %v388_v16  ;;  %702 = vmatmul.f32.vlgmr.msrb.gmra.mxu1 %v393_v60 }
  0xca   :  { %794 = vmatpush.msra.mxu1 %v389_v17 }
 0x12c   :  { %v396_v24 = vpop.xlane.xlu2 %395 }
 0x12d   :  { %v397_v47 = vadd.f32 1e-06, %v396_v24 }
 0x12f   :  { %v398_v3 = vmul.f32 %v397_v47, %v1319_v37  ;;  %v399_v59 = vmul.f32 %v397_v47, %v1340_v57 }
 0x131   :  { %v400_v61 = vrot.slane %v398_v3, 4  ;;  %v406_v5 = vrot.slane %v399_v59, 4 }
 0x133   :  { %v401_v55 = vadd.f32 %v400_v61, %v398_v3  ;;  %v407_v25 = vadd.f32 %v406_v5, %v399_v59 }
 0x135   :  { %v402_v48 = vrot.slane %v401_v55, 2  ;;  %v408_v33 = vrot.slane %v407_v25, 2 }
 0x137   :  { %v403_v18 = vadd.f32 %v402_v48, %v401_v55  ;;  %v409_v35 = vadd.f32 %v408_v33, %v407_v25  ;;  %v1431_v55 = vstv %s1520_s3 }
 0x139   :  { %v404_v40 = vrot.slane %v403_v18, 1  ;;  %v410_v34 = vrot.slane %v409_v35, 1 }
 0x13b   :  { %v405_v7 = vadd.f32 %v404_v40, %v403_v18  ;;  %v411_v63 = vadd.f32 %v410_v34, %v409_v35 }
 0x13d   :  { %v1411_v38 = vadd.f32 256.0, %v405_v7  ;;  %v1413_v26 = vadd.f32 256.0, %v411_v63 }
 0x13f   :  { %924 = vrcp.f32 %v1411_v38  ;;  %vm419_vm5 = vweird.f32 %v1411_v38  ;;  %v439_v34 = vand.u32 2147483648, %v1413_v26  ;;  %vm433_vm8 = vweird.f32 %v1413_v26 }
 0x140   :  { %926 = vrcp.f32 %v1413_v26  ;;  %v437_v7 = vand.u32 2147483647, %v1413_v26 }
 0x145   :  { %v683_v49 = vpop.f32.mrf.mxu0  ;;  %v459_v27 = vpop.f32.mrf.mxu2 }
 0x146   :  { %v703_v32 = vpop.f32.mrf.mxu1  ;;  %v479_v2 = vpop.f32.mrf.mxu3 }
 0x147   :  { %v704_v36 = vadd.f32 %v703_v32, %v683_v49  ;;  %v480_v31 = vadd.f32 %v479_v2, %v459_v27  ;;  %v1417_v23 = vpop.eup %924 }
 0x148   :  { %v1419_v16 = vpop.eup %926  ;;  %v415_v17 = vmul.f32 %v1417_v23, %v1411_v38  ;;  %vm420_vm3 = vweird.f32 %v1417_v23 }
 0x149   :  { %706 = vxpose.xlu1.b32.start.end [1/1] (short) (narrow) %v704_v36, 32  ;;  %482 = vxpose.xlu0.b32.start.end [1/1] (short) (narrow) %v480_v31, 32  ;;  %v429_v30 = vmul.f32 %v1419_v16, %v1413_v26  ;;  %vm434_vm4 = vweird.f32 %v1419_v16  ;;  %vm421_vm7 = vmor %vm419_vm5, %vm420_vm3 }
 0x14a   :  { %v416_v2 = vsub.f32 1.0, %v415_v17  ;;  %vm435_vm6 = vmor %vm433_vm8, %vm434_vm4 }
 0x14b   :  { %v430_v31 = vsub.f32 1.0, %v429_v30 }
 0x14c   :  { %v417_v24 = vmul.f32 %v1417_v23, %v416_v2 }
 0x14d   :  { %v431_v47 = vmul.f32 %v1419_v16, %v430_v31 }
 0x14f   :  { %v432_v40 = vadd.f32 %v1419_v16, %v431_v47 }
 0x1d2   :  { %619 = vadd.xlane.f32.xlu0 %v618_v44 }
 0x1ed   :  { %v722_v29 = vpop.trf.xlu1  ;;  %v498_v52 = vpop.trf.xlu0 }
 0x1ee   :  { %892 = vmatmul.msk.f32.vlgmr.msra.gmra.mxu0 %vm514_vm10, %v722_v29  ;;  %896 = vmatmul.msk.f32.vlgmr.msra.gmra.mxu1 %vm514_vm10, %v722_v29 }
 0x1ef   :  { %884 = vmatmul.msk.f32.vlgmr.msra.gmra.mxu2 %vm514_vm10, %v498_v52  ;;  %888 = vmatmul.msk.f32.vlgmr.msra.gmra.mxu3 %vm514_vm10, %v498_v52 }
 0x1f5   :  { %v723_v39 = vpop.trf.xlu1  ;;  %v499_v28 = vpop.trf.xlu0 }
 0x1f6   :  { %893 = vmatmul.msk.f32.gmra.mxu0 %vm514_vm10, %v723_v39  ;;  %897 = vmatmul.msk.f32.gmra.mxu1 %vm514_vm10, %v723_v39 }
 0x1f7   :  { %885 = vmatmul.msk.f32.gmra.mxu2 %vm514_vm10, %v499_v28  ;;  %889 = vmatmul.msk.f32.gmra.mxu3 %vm514_vm10, %v499_v28 }
 0x1fd   :  { %v724_v58 = vpop.trf.xlu1  ;;  %v500_v43 = vpop.trf.xlu0 }
 0x1fe   :  { %894 = vmatmul.msk.f32.gmra.mxu0 %vm514_vm10, %v724_v58  ;;  %898 = vmatmul.msk.f32.gmra.mxu1 %vm514_vm10, %v724_v58 }
 0x1ff   :  { %886 = vmatmul.msk.f32.gmra.mxu2 %vm514_vm10, %v500_v43  ;;  %890 = vmatmul.msk.f32.gmra.mxu3 %vm514_vm10, %v500_v43 }
 0x205   :  { %v725_v46 = vpop.trf.xlu1  ;;  %v501_v51 = vpop.trf.xlu0 }
 0x206   :  { %895 = vmatmul.msk.f32.gmra.mxu0 %vm514_vm10, %v725_v46  ;;  %899 = vmatmul.msk.f32.gmra.mxu1 %vm514_vm10, %v725_v46 }
 0x207   :  { %887 = vmatmul.msk.f32.gmra.mxu2 %vm514_vm10, %v501_v51  ;;  %891 = vmatmul.msk.f32.gmra.mxu3 %vm514_vm10, %v501_v51  ;;  %vm438_vm10 = vcmp.eq.f32.partialorder %v437_v7, 8.507059e+37 }
 0x245   :  { %v620_v53 = vpop.xlane.xlu0 %619 }
 0x246   :  { %v621_v62 = vadd.f32 1e-06, %v620_v53 }
 0x248   :  { %v622_v1 = vmul.f32 %v621_v62, %v1372_v19  ;;  %v623_v56 = vmul.f32 %v621_v62, %v1381_v50  ;;  %v418_v62 = vadd.f32 %v1417_v23, %v417_v24 }
 0x24a   :  { %v624_v41 = vrot.slane %v622_v1, 4  ;;  %v630_v37 = vrot.slane %v623_v56, 4  ;;  %v422_v63 = vsel %vm421_vm7, %v1417_v23, %v418_v62 }
 0x24c   :  { %v625_v57 = vadd.f32 %v624_v41, %v622_v1  ;;  %v631_v54 = vadd.f32 %v630_v37, %v623_v56  ;;  %v423_v1 = vand.u32 2147483647, %v1411_v38  ;;  %v425_v56 = vand.u32 2147483648, %v1411_v38 }
 0x24d   :  { %v440_v38 = vor.u32 1.1754944e-38, %v439_v34 }
 0x24e   :  { %v626_v0 = vrot.slane %v625_v57, 2  ;;  %v632_v42 = vrot.slane %v631_v54, 2  ;;  %vm424_vm9 = vcmp.eq.f32.partialorder %v423_v1, 8.507059e+37 }
 0x250   :  { %v627_v4 = vadd.f32 %v626_v0, %v625_v57  ;;  %v633_v20 = vadd.f32 %v632_v42, %v631_v54  ;;  %v436_v0 = vsel %vm435_vm6, %v1419_v16, %v432_v40  ;;  %v426_v42 = vor.u32 1.1754944e-38, %v425_v56  ;;  %v932_v40 = vld [vmem:[%s1517_s0 + $0x40] sm:$0xff]  ;;  %v933_v56 = vld [vmem:[%s1517_s0 + $0x48] sm:$0xff] }
 0x252   :  { %v628_v22 = vrot.slane %v627_v4, 1  ;;  %v634_v6 = vrot.slane %v633_v20, 1 }
 0x254   :  { %v629_v19 = vadd.f32 %v628_v22, %v627_v4  ;;  %v635_v50 = vadd.f32 %v634_v6, %v633_v20  ;;  %v1456_v4 = vsel %vm424_vm9, %v426_v42, %v422_v63  ;;  %v1458_v22 = vsel %vm438_vm10, %v440_v38, %v436_v0  ;;  %v936_v38 = vld [vmem:[%s1517_s0 + $0x60] sm:$0xff] }
 0x256   :  { %v636_v44 = vadd.f32 256.0, %v629_v19  ;;  %v637_v21 = vadd.f32 256.0, %v635_v50 }
 0x258   :  { %928 = vrcp.f32 %v636_v44  ;;  %v649_v52 = vand.u32 2147483648, %v636_v44  ;;  %v663_v39 = vand.u32 2147483648, %v637_v21  ;;  %v647_v28 = vand.u32 2147483647, %v636_v44 }
 0x259   :  { %930 = vrcp.f32 %v637_v21  ;;  %v661_v43 = vand.u32 2147483647, %v637_v21  ;;  %vm643_vm13 = vweird.f32 %v636_v44  ;;  %vm657_vm15 = vweird.f32 %v637_v21 }
 0x25a   :  { %v650_v59 = vor.u32 1.1754944e-38, %v649_v52  ;;  %v664_v61 = vor.u32 1.1754944e-38, %v663_v39  ;;  %vm648_vm1 = vcmp.eq.f32.partialorder %v647_v28, 8.507059e+37 }
 0x25b   :  { %vm662_vm2 = vcmp.eq.f32.partialorder %v661_v43, 8.507059e+37  ;;  %v1536_v43 = vld [vmem:[#allocation6_spill] sm:$0xff] }
 0x25e   :  { %v929_v45 = vpop.eup %928 }
 0x25f   :  { %v931_v60 = vpop.eup %930  ;;  %v639_v49 = vmul.f32 %v929_v45, %v636_v44  ;;  %vm644_vm11 = vweird.f32 %v929_v45 }
 0x260   :  { %v653_v27 = vmul.f32 %v931_v60, %v637_v21  ;;  %vm658_vm12 = vweird.f32 %v931_v60  ;;  %vm645_vm14 = vmor %vm643_vm13, %vm644_vm11 }
 0x261   :  { %v640_v32 = vsub.f32 1.0, %v639_v49  ;;  %vm659_vm0 = vmor %vm657_vm15, %vm658_vm12 }
 0x262   :  { %v654_v36 = vsub.f32 1.0, %v653_v27 }
 0x263   :  { %v641_v29 = vmul.f32 %v929_v45, %v640_v32 }
 0x264   :  { %v655_v58 = vmul.f32 %v931_v60, %v654_v36 }
 0x265   :  { %v642_v46 = vadd.f32 %v929_v45, %v641_v29 }
 0x266   :  { %v656_v51 = vadd.f32 %v931_v60, %v655_v58 }
 0x267   :  { %v646_v3 = vsel %vm645_vm14, %v929_v45, %v642_v46 }
 0x268   :  { %v660_v5 = vsel %vm659_vm0, %v931_v60, %v656_v51  ;;  %v1433_v25 = vsel %vm648_vm1, %v650_v59, %v646_v3  ;;  %v1537_v51 = vld [vmem:[#allocation7_spill] sm:$0xff] }
 0x269   :  { %v1435_v33 = vsel %vm662_vm2, %v664_v61, %v660_v5 }
 0x26b   :  { %v767_v48 = vpop.f32.mrf.mxu0  ;;  %v796_v18 = vpop.f32.mrf.mxu1 }
 0x26c   :  { %v808_v35 = vmul.f32 %v767_v48, %v1433_v25  ;;  %v809_v53 = vmul.f32 %v796_v18, %v1435_v33 }
 0x26e   :  { %v816_v41 = vmul.f32 %v808_v35, %v1431_v55  ;;  %v817_v37 = vmul.f32 %v809_v53, %v1431_v55 }
 0x270   :  { %v824_v57 = vadd.f32 %v816_v41, %v1059_v14  ;;  %v825_v54 = vadd.f32 %v817_v37, %v1064_v15  ;;  %v935_v41 = vld [vmem:[%s1517_s0 + $0x78] sm:$0xff] }
 0x272   :  { %833 = vst [vmem:[#allocation3 + $0x40] sm:$0xff] %v824_v57  ;;  %v544_v20 = vpop.f32.mrf.mxu2  ;;  %v573_v26 = vpop.f32.mrf.mxu3 }
 0x273   :  { %834 = vst [vmem:[#allocation3 + $0x48] sm:$0xff] %v825_v54  ;;  %v585_v14 = vmul.f32 %v544_v20, %v1456_v4  ;;  %v586_v15 = vmul.f32 %v573_v26, %v1458_v22  ;;  %v770_v6 = vpop.f32.mrf.mxu0  ;;  %v799_v19 = vpop.f32.mrf.mxu1 }
 0x274   :  { %v810_v50 = vmul.f32 %v770_v6, %v1433_v25  ;;  %v811_v44 = vmul.f32 %v799_v19, %v1435_v33 }
 0x275   :  { %v594_v21 = vmul.f32 %v1431_v55, %v585_v14  ;;  %v595_v23 = vmul.f32 %v1431_v55, %v586_v15 }
 0x276   :  { %v818_v16 = vmul.f32 %v810_v50, %v1431_v55  ;;  %v819_v45 = vmul.f32 %v811_v44, %v1431_v55 }
 0x277   :  { %v602_v17 = vadd.f32 %v594_v21, %v1047_v12  ;;  %v603_v30 = vadd.f32 %v595_v23, %v1052_v13 }
 0x278   :  { %v826_v60 = vadd.f32 %v818_v16, %v1035_v10  ;;  %v827_v49 = vadd.f32 %v819_v45, %v1040_v11 }
 0x279   :  { %610 = vst [vmem:[#allocation3] sm:$0xff] %v602_v17 }
 0x27a   :  { %611 = vst [vmem:[#allocation3 + $0x8] sm:$0xff] %v603_v30  ;;  %v547_v27 = vpop.f32.mrf.mxu2  ;;  %v576_v32 = vpop.f32.mrf.mxu3 }
 0x27b   :  { %835 = vst [vmem:[#allocation3 + $0x50] sm:$0xff] %v826_v60  ;;  %v587_v36 = vmul.f32 %v547_v27, %v1456_v4  ;;  %v588_v2 = vmul.f32 %v576_v32, %v1458_v22  ;;  %v773_v31 = vpop.f32.mrf.mxu0  ;;  %v802_v29 = vpop.f32.mrf.mxu1 }
 0x27c   :  { %836 = vst [vmem:[#allocation3 + $0x58] sm:$0xff] %v827_v49  ;;  %v812_v12 = vmul.f32 %v773_v31, %v1433_v25  ;;  %v813_v13 = vmul.f32 %v802_v29, %v1435_v33 }
 0x27d   :  { %v596_v10 = vmul.f32 %v1431_v55, %v587_v36  ;;  %v597_v11 = vmul.f32 %v1431_v55, %v588_v2 }
 0x27e   :  { %v820_v52 = vmul.f32 %v812_v12, %v1431_v55  ;;  %v821_v39 = vmul.f32 %v813_v13, %v1431_v55 }
 0x27f   :  { %v604_v28 = vadd.f32 %v596_v10, %v1025_v8  ;;  %v605_v58 = vadd.f32 %v597_v11, %v1030_v9 }
 0x280   :  { %v828_v46 = vadd.f32 %v820_v52, %v1536_v43  ;;  %v829_v24 = vadd.f32 %v821_v39, %v1537_v51 }
 0x281   :  { %612 = vst [vmem:[#allocation3 + $0x10] sm:$0xff] %v604_v28 }
 0x282   :  { %613 = vst [vmem:[#allocation3 + $0x18] sm:$0xff] %v605_v58  ;;  %v550_v47 = vpop.f32.mrf.mxu2  ;;  %v579_v3 = vpop.f32.mrf.mxu3 }
 0x283   :  { %837 = vst [vmem:[#allocation3 + $0x60] sm:$0xff] %v828_v46  ;;  %v589_v59 = vmul.f32 %v550_v47, %v1456_v4  ;;  %v590_v61 = vmul.f32 %v579_v3, %v1458_v22  ;;  %v776_v5 = vpop.f32.mrf.mxu0  ;;  %v805_v48 = vpop.f32.mrf.mxu1 }
 0x284   :  { %838 = vst [vmem:[#allocation3 + $0x68] sm:$0xff] %v829_v24  ;;  %v814_v8 = vmul.f32 %v776_v5, %v1433_v25  ;;  %v815_v9 = vmul.f32 %v805_v48, %v1435_v33  ;;  %v934_v33 = vld [vmem:[%s1517_s0 + $0x70] sm:$0xff] }
 0x285   :  { %v598_v18 = vmul.f32 %v1431_v55, %v589_v59  ;;  %v599_v35 = vmul.f32 %v1431_v55, %v590_v61 }
 0x286   :  { %v822_v53 = vmul.f32 %v814_v8, %v1431_v55  ;;  %v823_v62 = vmul.f32 %v815_v9, %v1431_v55 }
 0x287   :  { %v606_v1 = vadd.f32 %v932_v40, %v598_v18  ;;  %v607_v25 = vadd.f32 %v933_v56, %v599_v35 }
 0x288   :  { %v830_v34 = vadd.f32 %v934_v33, %v822_v53  ;;  %v831_v37 = vadd.f32 %v935_v41, %v823_v62 }
 0x289   :  { %614 = vst [vmem:[#allocation3 + $0x20] sm:$0xff] %v606_v1 }
 0x28a   :  { %615 = vst [vmem:[#allocation3 + $0x28] sm:$0xff] %v607_v25  ;;  %v553_v7 = vpop.f32.mrf.mxu2  ;;  %v582_v57 = vpop.f32.mrf.mxu3 }
 0x28b   :  { %839 = vst [vmem:[#allocation3 + $0x70] sm:$0xff] %v830_v34  ;;  %v591_v54 = vmul.f32 %v553_v7, %v1456_v4  ;;  %v592_v63 = vmul.f32 %v582_v57, %v1458_v22  ;;  %v937_v4 = vld [vmem:[%s1517_s0 + $0x68] sm:$0xff] }
 0x28c   :  { %840 = vst [vmem:[#allocation3 + $0x78] sm:$0xff] %v831_v37 }
 0x28d   :  { %v600_v0 = vmul.f32 %v1431_v55, %v591_v54  ;;  %v601_v42 = vmul.f32 %v1431_v55, %v592_v63 }
 0x28f   :  { %v608_v20 = vadd.f32 %v936_v38, %v600_v0  ;;  %v609_v22 = vadd.f32 %v937_v4, %v601_v42 }
 0x291   :  { %616 = vst [vmem:[#allocation3 + $0x30] sm:$0xff] %v608_v20 }
 0x292   :  { %617 = vst [vmem:[#allocation3 + $0x38] sm:$0xff] %v609_v22 }
 0x293   :  { %853 = dma.vmem_to_hbm [thread:$0]  %s846_s27, 2048, %s848_s30, [#allocation4], %s967_s9, %s967_s9, %s968_s4  }
 0x294   :  { %962 = dma.done.wait [#allocation4], 2048  }
 0x295   :  { %963 = vsyncadd [#allocation4], 4294965248 }
 0x296   :  { %858 = vsyncpa [#allocation4], 1 }

</bundles_post_ra>
